<compile_context>
chip_gen: v6e
topology: v6e:2x2x1
jax: 0.10.0
libtpu: 0.0.40
codegen_flags: <defaults>
</compile_context>

<pallas_src>
import jax
import jax.numpy as jnp
from jax.experimental import pallas as pl
from jax.experimental.pallas import tpu as pltpu


def _round_up(n, m):
    return ((n + m - 1) // m) * m


# ---------------------------------------------------------------------------
# Kernel: whole 5-layer MLP for one batch tile.
# ---------------------------------------------------------------------------
def _nninv_kernel(x_ref,
                  w1_ref, b1_ref,
                  w2_ref, b2_ref,
                  w3_ref, b3_ref,
                  w4_ref, b4_ref,
                  w5_ref, b5_ref,
                  o_ref):
    x = x_ref[...]                      # (TB, IN) f32, IN is the tiny t-SNE dim
    in_size = x_ref.shape[1]

    # Layer 1: K is tiny (e.g. 2), so do it as VPU broadcast-FMAs rather than a
    # nearly-empty f32 MXU pass. Output width is pre-padded to 128 (exact,
    # zero-padded), so the activation is lane-dense.
    acc = b1_ref[...]                                    # (1, 128)
    for k in range(in_size):                             # unrolled at trace time
        acc = acc + x[:, k:k + 1] * w1_ref[k:k + 1, :]   # (TB,1)*(1,128) -> (TB,128)
    # Fused ReLU + downcast: only the bf16 activation stays live.
    h = jnp.maximum(acc, 0.0).astype(jnp.bfloat16)

    # Layers 2..4: bf16 MXU inputs, f32 accumulation, fused bias+ReLU+downcast.
    for w_ref, b_ref in ((w2_ref, b2_ref), (w3_ref, b3_ref), (w4_ref, b4_ref)):
        acc = jnp.dot(h, w_ref[...], preferred_element_type=jnp.float32)
        h = jnp.maximum(acc + b_ref[...], 0.0).astype(jnp.bfloat16)

    # Layer 5: bf16 matmul, f32 bias, sigmoid via EUP exp + approx reciprocal.
    acc = jnp.dot(h, w5_ref[...], preferred_element_type=jnp.float32) + b5_ref[...]
    sig = pl.reciprocal(1.0 + jnp.exp(-acc), approx=True)
    o_ref[...] = sig.astype(o_ref.dtype)


# ---------------------------------------------------------------------------
# One-time host-side parameter prep (call once, outside the hot path).
# ---------------------------------------------------------------------------
def prepare_params(params):
    """Pad layer-1 width 64 -> 128 (exact: zeros) and cast the large weights to
    bf16 for native-rate MXU. Layer-1 weight and all biases stay f32."""
    (w1, b1), (w2, b2), (w3, b3), (w4, b4), (w5, b5) = params
    in_size, h1 = w1.shape
    h1_pad = _round_up(max(h1, 128), 128)          # 64 -> 128

    w1p = jnp.zeros((in_size, h1_pad), jnp.float32).at[:, :h1].set(w1)
    b1p = jnp.zeros((1, h1_pad), jnp.float32).at[:, :h1].set(b1)
    w2p = jnp.zeros((h1_pad, w2.shape[1]), jnp.float32).at[:h1, :].set(w2)

    bf16 = lambda w: w.astype(jnp.bfloat16)
    f32 = lambda b: b.astype(jnp.float32)

    return [w1p, b1p,
            bf16(w2p), f32(b2),
            bf16(w3), f32(b3),
            bf16(w4), f32(b4),
            bf16(w5), f32(b5)]


# ---------------------------------------------------------------------------
# Wrapper
# ---------------------------------------------------------------------------
def nninv_forward(x, prepped, *, batch_tile=1024, out_dtype=jnp.float32):
    """x: [B, input_size] float32. prepped: output of prepare_params()."""
    B, in_size = x.shape
    out_size = prepped[8].shape[1]                 # w5 is (512, out)

    # Batch tiling:
    #   * multiples of 8 sublanes; default tile 1024 (amortizes the ~0.35 us
    #     per-step pipeline overhead, fills v6e/v7x MXU rows many times over);
    #   * capped at round_up(ceil(B/2), 8) so the parallel grid axis has >= 2
    #     steps whenever B > 8, letting v7x shard across both TensorCores.
    # Activation VMEM at tb=1024 peaks well under 16 MiB, so this fits every
    # generation's scoped-VMEM limit (v5e 16, v6e 32, v7x 32/64 MiB).
    tb = _round_up(min(batch_tile, _round_up(max(pl.cdiv(B, 2), 8), 8)), 8)
    B_pad = _round_up(B, tb)
    x_p = x if B_pad == B else jnp.pad(x, ((0, B_pad - B), (0, 0)))

    grid = (B_pad // tb,)

    def batch_map(i):
        return (i, 0)

    def const_map(i):
        # Constant block index => grid-invariant operand: Mosaic keeps the
        # weight tile resident in VMEM rather than re-issuing its DMA per step.
        return (0, 0)

    weight_specs = [pl.BlockSpec(a.shape, const_map) for a in prepped]

    # Scheduler hint: flops / transcendentals / bytes for the whole call.
    macs = (in_size * 64 + 64 * 128 + 128 * 256 + 256 * 512 + 512 * out_size)
    weight_bytes = sum(int(a.size) * a.dtype.itemsize for a in prepped)
    cost = pl.CostEstimate(
        flops=2 * B_pad * macs,
        transcendentals=B_pad * out_size,                      # exp in sigmoid
        bytes_accessed=B_pad * (in_size * 4
                                + out_size * jnp.dtype(out_dtype).itemsize)
                       + weight_bytes,
    )

    out = pl.pallas_call(
        _nninv_kernel,
        out_shape=jax.ShapeDtypeStruct((B_pad, out_size), out_dtype),
        grid_spec=pltpu.PrefetchScalarGridSpec(
            num_scalar_prefetch=0,
            grid=grid,
            in_specs=[pl.BlockSpec((tb, in_size), batch_map)] + weight_specs,
            out_specs=pl.BlockSpec((tb, out_size), batch_map),
        ),
        compiler_params=pltpu.CompilerParams(
            dimension_semantics=("parallel",),
            # Above v5e's 16 MiB default scoped limit (needed once tb grows),
            # below v7x's 64 MiB physical VMEM.
            vmem_limit_bytes=48 * 1024 * 1024),
        cost_estimate=cost,
    )(x_p, *prepped)
    return out[:B]


# ---------------------------------------------------------------------------
# Deterministic parameter construction (synthetic, not a checkpoint)
# ---------------------------------------------------------------------------
def make_params(key, input_size, output_size):
    dims = [input_size, 64, 128, 256, 512, output_size]
    params = []
    for i in range(5):
        key, kw, kb = jax.random.split(key, 3)
        fan_in = dims[i]
        scale = 1.0 / jnp.sqrt(fan_in)
        w = jax.random.uniform(kw, (dims[i], dims[i + 1]), jnp.float32,
                               minval=-scale, maxval=scale)
        b = jax.random.uniform(kb, (1, dims[i + 1]), jnp.float32,
                               minval=-scale, maxval=scale)
        params.append((w, b))
    return params


def nninv_reference(x, params):
    """Pure-JAX f32 reference (mirrors the PyTorch forward exactly)."""
    h = x
    for i, (w, b) in enumerate(params):
        h = h @ w + b
        h = jnp.maximum(h, 0.0) if i < 4 else jax.nn.sigmoid(h)
    return h


# ---------------------------------------------------------------------------
if __name__ == "__main__":
    INPUT_SIZE = 2      # t-SNE embedding dimension
    OUTPUT_SIZE = 128   # reconstructed feature dimension
    BATCH = 16

    key = jax.random.PRNGKey(0)
    key, kx = jax.random.split(key)
    x = jax.random.normal(kx, (BATCH, INPUT_SIZE), jnp.float32)
    params = make_params(key, INPUT_SIZE, OUTPUT_SIZE)
    prepped = prepare_params(params)

    y = nninv_forward(x, prepped, batch_tile=1024)
    y = jax.block_until_ready(y)

    y_ref = nninv_reference(x, params)
    assert y.shape == (BATCH, OUTPUT_SIZE)
    # bf16 MXU inputs (layers 2..5) + approx reciprocal in sigmoid => loosened
    # tolerance vs. the f32 reference.
    assert jnp.allclose(y, y_ref, atol=3e-2, rtol=3e-2), "mismatch vs reference"

    print("KERNEL_OK")
</pallas_src>

<mosaic_0001>
module attributes {stable_mosaic.version = 11 : i64} {
  func.func @_nninv_kernel(%arg0: i32, %arg1: memref<8x2xf32, #tpu.memory_space<vmem>>, %arg2: memref<2x128xf32, #tpu.memory_space<vmem>>, %arg3: memref<1x128xf32, #tpu.memory_space<vmem>>, %arg4: memref<128x128xbf16, #tpu.memory_space<vmem>>, %arg5: memref<1x128xf32, #tpu.memory_space<vmem>>, %arg6: memref<128x256xbf16, #tpu.memory_space<vmem>>, %arg7: memref<1x256xf32, #tpu.memory_space<vmem>>, %arg8: memref<256x512xbf16, #tpu.memory_space<vmem>>, %arg9: memref<1x512xf32, #tpu.memory_space<vmem>>, %arg10: memref<512x128xbf16, #tpu.memory_space<vmem>>, %arg11: memref<1x128xf32, #tpu.memory_space<vmem>>, %arg12: memref<8x128xf32, #tpu.memory_space<vmem>>) attributes {dimension_semantics = [#tpu.dimension_semantics<parallel>], iteration_bounds = array<i64: 2>, scalar_prefetch = 0 : i64, scratch_operands = 0 : i64, tpu.core_type = #tpu.core_type<tc>, window_params = [{transform_indices = @transform_0, window_bounds = array<i64: 8, 2>}, {pipeline_mode = #tpu.pipeline_mode<synchronous>, transform_indices = @transform_1, window_bounds = array<i64: 2, 128>}, {pipeline_mode = #tpu.pipeline_mode<synchronous>, transform_indices = @transform_2, window_bounds = array<i64: 1, 128>}, {pipeline_mode = #tpu.pipeline_mode<synchronous>, transform_indices = @transform_3, window_bounds = array<i64: 128, 128>}, {pipeline_mode = #tpu.pipeline_mode<synchronous>, transform_indices = @transform_4, window_bounds = array<i64: 1, 128>}, {pipeline_mode = #tpu.pipeline_mode<synchronous>, transform_indices = @transform_5, window_bounds = array<i64: 128, 256>}, {pipeline_mode = #tpu.pipeline_mode<synchronous>, transform_indices = @transform_6, window_bounds = array<i64: 1, 256>}, {pipeline_mode = #tpu.pipeline_mode<synchronous>, transform_indices = @transform_7, window_bounds = array<i64: 256, 512>}, {pipeline_mode = #tpu.pipeline_mode<synchronous>, transform_indices = @transform_8, window_bounds = array<i64: 1, 512>}, {pipeline_mode = #tpu.pipeline_mode<synchronous>, transform_indices = @transform_9, window_bounds = array<i64: 512, 128>}, {pipeline_mode = #tpu.pipeline_mode<synchronous>, transform_indices = @transform_10, window_bounds = array<i64: 1, 128>}, {transform_indices = @transform_11, window_bounds = array<i64: 8, 128>}]} {
    %c0 = arith.constant 0 : index
    %c0_0 = arith.constant 0 : index
    %0 = vector.load %arg1[%c0, %c0_0] : memref<8x2xf32, #tpu.memory_space<vmem>>, vector<8x2xf32>
    %c0_1 = arith.constant 0 : index
    %c0_2 = arith.constant 0 : index
    %1 = vector.load %arg3[%c0_1, %c0_2] : memref<1x128xf32, #tpu.memory_space<vmem>>, vector<1x128xf32>
    %2 = vector.extract_strided_slice %0 {offsets = [0, 0], sizes = [8, 1], strides = [1, 1]} : vector<8x2xf32> to vector<8x1xf32>
    %c0_3 = arith.constant 0 : index
    %c0_4 = arith.constant 0 : index
    %3 = vector.load %arg2[%c0_3, %c0_4] : memref<2x128xf32, #tpu.memory_space<vmem>>, vector<1x128xf32>
    %4 = vector.broadcast %2 : vector<8x1xf32> to vector<8x128xf32>
    %5 = vector.broadcast %3 : vector<1x128xf32> to vector<8x128xf32>
    %6 = arith.mulf %4, %5 : vector<8x128xf32>
    %7 = vector.broadcast %1 : vector<1x128xf32> to vector<8x128xf32>
    %8 = arith.addf %7, %6 : vector<8x128xf32>
    %9 = vector.extract_strided_slice %0 {offsets = [0, 1], sizes = [8, 1], strides = [1, 1]} : vector<8x2xf32> to vector<8x1xf32>
    %c1 = arith.constant 1 : index
    %c0_5 = arith.constant 0 : index
    %10 = vector.load %arg2[%c1, %c0_5] : memref<2x128xf32, #tpu.memory_space<vmem>>, vector<1x128xf32>
    %11 = vector.broadcast %9 : vector<8x1xf32> to vector<8x128xf32>
    %12 = vector.broadcast %10 : vector<1x128xf32> to vector<8x128xf32>
    %13 = arith.mulf %11, %12 : vector<8x128xf32>
    %14 = arith.addf %8, %13 : vector<8x128xf32>
    %cst = arith.constant 0.000000e+00 : f32
    %15 = vector.broadcast %cst : f32 to vector<8x128xf32>
    %16 = arith.maximumf %14, %15 : vector<8x128xf32>
    %17 = arith.truncf %16 : vector<8x128xf32> to vector<8x128xbf16>
    %c0_6 = arith.constant 0 : index
    %c0_7 = arith.constant 0 : index
    %18 = vector.load %arg4[%c0_6, %c0_7] : memref<128x128xbf16, #tpu.memory_space<vmem>>, vector<128x128xbf16>
    %cst_8 = arith.constant dense<0.000000e+00> : vector<8x128xf32>
    %19 = tpu.matmul %17, %18, %cst_8 {dimension_numbers = #tpu.dot_dimension_numbers<[1], [0], [0], [1], [0, 0, 1, 1], [], []>} : vector<8x128xbf16>, vector<128x128xbf16>, vector<8x128xf32> -> vector<8x128xf32>
    %c0_9 = arith.constant 0 : index
    %c0_10 = arith.constant 0 : index
    %20 = vector.load %arg5[%c0_9, %c0_10] : memref<1x128xf32, #tpu.memory_space<vmem>>, vector<1x128xf32>
    %21 = vector.broadcast %20 : vector<1x128xf32> to vector<8x128xf32>
    %22 = arith.addf %19, %21 : vector<8x128xf32>
    %cst_11 = arith.constant 0.000000e+00 : f32
    %23 = vector.broadcast %cst_11 : f32 to vector<8x128xf32>
    %24 = arith.maximumf %22, %23 : vector<8x128xf32>
    %25 = arith.truncf %24 : vector<8x128xf32> to vector<8x128xbf16>
    %c0_12 = arith.constant 0 : index
    %c0_13 = arith.constant 0 : index
    %26 = vector.load %arg6[%c0_12, %c0_13] : memref<128x256xbf16, #tpu.memory_space<vmem>>, vector<128x256xbf16>
    %cst_14 = arith.constant dense<0.000000e+00> : vector<8x256xf32>
    %27 = tpu.matmul %25, %26, %cst_14 {dimension_numbers = #tpu.dot_dimension_numbers<[1], [0], [0], [1], [0, 0, 1, 1], [], []>} : vector<8x128xbf16>, vector<128x256xbf16>, vector<8x256xf32> -> vector<8x256xf32>
    %c0_15 = arith.constant 0 : index
    %c0_16 = arith.constant 0 : index
    %28 = vector.load %arg7[%c0_15, %c0_16] : memref<1x256xf32, #tpu.memory_space<vmem>>, vector<1x256xf32>
    %29 = vector.broadcast %28 : vector<1x256xf32> to vector<8x256xf32>
    %30 = arith.addf %27, %29 : vector<8x256xf32>
    %cst_17 = arith.constant 0.000000e+00 : f32
    %31 = vector.broadcast %cst_17 : f32 to vector<8x256xf32>
    %32 = arith.maximumf %30, %31 : vector<8x256xf32>
    %33 = arith.truncf %32 : vector<8x256xf32> to vector<8x256xbf16>
    %c0_18 = arith.constant 0 : index
    %c0_19 = arith.constant 0 : index
    %34 = vector.load %arg8[%c0_18, %c0_19] : memref<256x512xbf16, #tpu.memory_space<vmem>>, vector<256x512xbf16>
    %cst_20 = arith.constant dense<0.000000e+00> : vector<8x512xf32>
    %35 = tpu.matmul %33, %34, %cst_20 {dimension_numbers = #tpu.dot_dimension_numbers<[1], [0], [0], [1], [0, 0, 1, 1], [], []>} : vector<8x256xbf16>, vector<256x512xbf16>, vector<8x512xf32> -> vector<8x512xf32>
    %c0_21 = arith.constant 0 : index
    %c0_22 = arith.constant 0 : index
    %36 = vector.load %arg9[%c0_21, %c0_22] : memref<1x512xf32, #tpu.memory_space<vmem>>, vector<1x512xf32>
    %37 = vector.broadcast %36 : vector<1x512xf32> to vector<8x512xf32>
    %38 = arith.addf %35, %37 : vector<8x512xf32>
    %cst_23 = arith.constant 0.000000e+00 : f32
    %39 = vector.broadcast %cst_23 : f32 to vector<8x512xf32>
    %40 = arith.maximumf %38, %39 : vector<8x512xf32>
    %41 = arith.truncf %40 : vector<8x512xf32> to vector<8x512xbf16>
    %c0_24 = arith.constant 0 : index
    %c0_25 = arith.constant 0 : index
    %42 = vector.load %arg10[%c0_24, %c0_25] : memref<512x128xbf16, #tpu.memory_space<vmem>>, vector<512x128xbf16>
    %cst_26 = arith.constant dense<0.000000e+00> : vector<8x128xf32>
    %43 = tpu.matmul %41, %42, %cst_26 {dimension_numbers = #tpu.dot_dimension_numbers<[1], [0], [0], [1], [0, 0, 1, 1], [], []>} : vector<8x512xbf16>, vector<512x128xbf16>, vector<8x128xf32> -> vector<8x128xf32>
    %c0_27 = arith.constant 0 : index
    %c0_28 = arith.constant 0 : index
    %44 = vector.load %arg11[%c0_27, %c0_28] : memref<1x128xf32, #tpu.memory_space<vmem>>, vector<1x128xf32>
    %45 = vector.broadcast %44 : vector<1x128xf32> to vector<8x128xf32>
    %46 = arith.addf %43, %45 : vector<8x128xf32>
    %cst_29 = arith.constant 0.000000e+00 : f32
    %47 = vector.broadcast %cst_29 : f32 to vector<8x128xf32>
    %48 = arith.subf %47, %46 : vector<8x128xf32>
    %49 = math.exp %48 : vector<8x128xf32>
    %cst_30 = arith.constant 1.000000e+00 : f32
    %50 = vector.broadcast %cst_30 : f32 to vector<8x128xf32>
    %51 = arith.addf %50, %49 : vector<8x128xf32>
    %52 = tpu.reciprocal %51 {approx = true} : vector<8x128xf32> -> vector<8x128xf32>
    %c0_31 = arith.constant 0 : index
    %c0_32 = arith.constant 0 : index
    %53 = vector.load %arg12[%c0_31, %c0_32] : memref<8x128xf32, #tpu.memory_space<vmem>>, vector<8x128xf32>
    tpu.vector_store %arg12[%c0_31, %c0_32], %52 {strides = array<i32>} : memref<8x128xf32, #tpu.memory_space<vmem>>, vector<8x128xf32>,
    return
  }
  func.func @transform_0(%arg0: i32) -> (i32, i32) {
    %c0_i32 = arith.constant 0 : i32
    %c0_i32_0 = arith.constant 0 : i32
    return %arg0, %c0_i32 : i32, i32
  }
  func.func @transform_1(%arg0: i32) -> (i32, i32) {
    %c0_i32 = arith.constant 0 : i32
    %c0_i32_0 = arith.constant 0 : i32
    %c0_i32_1 = arith.constant 0 : i32
    return %c0_i32, %c0_i32_0 : i32, i32
  }
  func.func @transform_2(%arg0: i32) -> (i32, i32) {
    %c0_i32 = arith.constant 0 : i32
    %c0_i32_0 = arith.constant 0 : i32
    %c0_i32_1 = arith.constant 0 : i32
    return %c0_i32, %c0_i32_0 : i32, i32
  }
  func.func @transform_3(%arg0: i32) -> (i32, i32) {
    %c0_i32 = arith.constant 0 : i32
    %c0_i32_0 = arith.constant 0 : i32
    %c0_i32_1 = arith.constant 0 : i32
    return %c0_i32, %c0_i32_0 : i32, i32
  }
  func.func @transform_4(%arg0: i32) -> (i32, i32) {
    %c0_i32 = arith.constant 0 : i32
    %c0_i32_0 = arith.constant 0 : i32
    %c0_i32_1 = arith.constant 0 : i32
    return %c0_i32, %c0_i32_0 : i32, i32
  }
  func.func @transform_5(%arg0: i32) -> (i32, i32) {
    %c0_i32 = arith.constant 0 : i32
    %c0_i32_0 = arith.constant 0 : i32
    %c0_i32_1 = arith.constant 0 : i32
    return %c0_i32, %c0_i32_0 : i32, i32
  }
  func.func @transform_6(%arg0: i32) -> (i32, i32) {
    %c0_i32 = arith.constant 0 : i32
    %c0_i32_0 = arith.constant 0 : i32
    %c0_i32_1 = arith.constant 0 : i32
    return %c0_i32, %c0_i32_0 : i32, i32
  }
  func.func @transform_7(%arg0: i32) -> (i32, i32) {
    %c0_i32 = arith.constant 0 : i32
    %c0_i32_0 = arith.constant 0 : i32
    %c0_i32_1 = arith.constant 0 : i32
    return %c0_i32, %c0_i32_0 : i32, i32
  }
  func.func @transform_8(%arg0: i32) -> (i32, i32) {
    %c0_i32 = arith.constant 0 : i32
    %c0_i32_0 = arith.constant 0 : i32
    %c0_i32_1 = arith.constant 0 : i32
    return %c0_i32, %c0_i32_0 : i32, i32
  }
  func.func @transform_9(%arg0: i32) -> (i32, i32) {
    %c0_i32 = arith.constant 0 : i32
    %c0_i32_0 = arith.constant 0 : i32
    %c0_i32_1 = arith.constant 0 : i32
    return %c0_i32, %c0_i32_0 : i32, i32
  }
  func.func @transform_10(%arg0: i32) -> (i32, i32) {
    %c0_i32 = arith.constant 0 : i32
    %c0_i32_0 = arith.constant 0 : i32
    %c0_i32_1 = arith.constant 0 : i32
    return %c0_i32, %c0_i32_0 : i32, i32
  }
  func.func @transform_11(%arg0: i32) -> (i32, i32) {
    %c0_i32 = arith.constant 0 : i32
    %c0_i32_0 = arith.constant 0 : i32
    return %arg0, %c0_i32 : i32, i32
  }
}

</mosaic_0001>

<bundles_post_ra>
// kernel: tpu_custom_call.1
= control target key start
LH: loop header
LB: loop body
LE: loop exit
PB: predicated region body
PF: predicated region fallthrough
CT: control target
= control target key end

     0   :  { %s2620_s0 = inlined_call_operand.vmem [shape: f32[16,2], index: 0, kind: input, shape index: {}]   ;;  %s2621_s1 = inlined_call_operand.vmem [shape: f32[2,128], index: 1, kind: input, shape index: {}]   ;;  %s2622_s2 = inlined_call_operand.vmem [shape: f32[1,128], index: 2, kind: input, shape index: {}]   ;;  %s2623_s3 = inlined_call_operand.hbm [shape: bf16[128,128], index: 3, kind: input, shape index: {}]   ;;  %s2624_s4 = inlined_call_operand.vmem [shape: f32[1,128], index: 4, kind: input, shape index: {}]   ;;  %s2625_s5 = inlined_call_operand.hbm [shape: bf16[128,256], index: 5, kind: input, shape index: {}]   ;;  %s2626_s6 = inlined_call_operand.vmem [shape: f32[1,256], index: 6, kind: input, shape index: {}]   ;;  %s2627_s7 = inlined_call_operand.hbm [shape: bf16[256,512], index: 7, kind: input, shape index: {}]   ;;  %s2628_s8 = inlined_call_operand.vmem [shape: f32[1,512], index: 8, kind: input, shape index: {}]   ;;  %s2629_s9 = inlined_call_operand.hbm [shape: bf16[512,128], index: 9, kind: input, shape index: {}]   ;;  %s2630_s10 = inlined_call_operand.vmem [shape: f32[1,128], index: 10, kind: input, shape index: {}]   ;;  %s2631_s11 = inlined_call_operand.hbm [shape: f32[16,128], index: 11, kind: output, shape index: {}]  }
   0x1   :  { %2634 = sst [smem:[#allocation16_spill]] %s2625_s5 }
   0x2   :  { %16 = vsyncpa [#allocation3], 0 }
   0x3   :  { %17 = vsyncpa [#allocation6], 0 }
   0x4   :  { %18 = vsyncpa [#allocation9], 0 }
   0x5   :  { %19 = vsyncpa [#allocation4], 0 }
   0x6   :  { %21 = vsyncpa [#allocation4 + $0x1], 0  ;;  %s2425_s17 = smov 0   ;;  %s2427_s18 = smov 0  }
   0x7   :  { %s2429_s19 = smov 0   ;;  %s2431_s20 = smov 0  }
   0x8 LB: > { %s2446_s21 = sadd.s32 4294967295, %s2348_s20   ;;  %s1700_s22 = sadd.s32 4294967294, %s2348_s20   ;;  %s2348_s20 = sphi %s2431_s20, %s2653_s20   ;;  %s2344_s19 = sphi %s2429_s19, %s2652_s19   ;;  %s2340_s18 = sphi %s2427_s18, %s2651_s18   ;;  %s2336_s17 = sphi %s2425_s17, %s2650_s17  }
   0x9   : > { %s2450_s23 = sadd.s32 1, %s2348_s20   ;;  %s270_s24 = sadd.s32 1, %s2344_s19 }
   0xa   : > { %s267_s25 = ssub.s32 %s2348_s20, %s2450_s23  ;;  %p280_p0 = scmp.ne.s32.totalorder %s2344_s19, %s2340_s18 }
   0xb   : > { %p268_p1 = scmp.eq.s32.totalorder %s267_s25, 0  ;;  %p281_p2 = scmp.eq.s32.totalorder %s2446_s21, 1 }
   0xc   : > { %p286_p3 = scmp.ne.s32.totalorder %s2340_s18, %s2336_s17  ;;  %p287_p4 = scmp.eq.s32.totalorder %s1700_s22, 1 }
   0xd   : > { %s2461_s26 = scalar_select %p268_p1, %s2344_s19, %s270_s24  }
   0xe   : > { %p2463_p5 = por %p281_p2, %p280_p0  ;;  %p2467_p6 = por %p287_p4, %p286_p3 }
   0xf   : > { %2635 = sst [smem:[#allocation15_spill]] %s2461_s26  ;;  %p1701_p7 = scmp.ge.s32.totalorder %s2348_s20, 1 }
  0x10   : > { %s2637_s28 = scalar_select %p2467_p6, 1, 0 }
  0x11   : > { %p294_p8 = scmp.lt.s32.totalorder %s2348_s20, 3  ;;  %p2632_p9 = scmp.eq.s32.totalorder %s2446_s21, 0 }
  0x12   : > { %s2350_s30 = smov [#allocation5]   ;;  %s2351_s14 = smov [#allocation2]  }
  0x13   : > { %p2474_p10 = pnand %p1701_p7, %p294_p8  ;;  %s328_s12 = sshll.u32 %s2350_s30, 4  ;;  %s329_s12 = int_to_ptr.vmem [resolvable:$true] %s328_s12 }
  0x14   : > { %s312_s15 = sshll.u32 %s2351_s14, 4  ;;  %s2183_s16 = scalar_lea.vmem %s329_s12, 2048  ;;  %s313_s15 = int_to_ptr.vmem [resolvable:$true] %s312_s15 }
  0x15   : > { %p1934_p11 = pneg %p2474_p10  ;;  %p2184_p0 = scmp.ne.s32.totalorder %s329_s12, %s2183_s16 }
  0x16   : > { %p2191_p3 = scmp.lt.s32.totalorder %s329_s12, %s329_s12  ;;  %p2192_p4 = scmp.lt.s32.totalorder %s2183_s16, %s2183_s16 }
  0x17   : > { %p2482_p12 = pnand %p2632_p9, %p1934_p11 }
  0x18   : > { %p2193_p7 = por %p2192_p4, %p2191_p3 }
  0x19   : > { %p2174_p13 = pneg %p2482_p12 }
  0x1b   : > { %p2186_p1 = pnand %p2184_p0, %p2174_p13 }
  0x1d   : > { %p2187_p2 = pneg %p2186_p1 }
  0x1f   : > { %p2194_p8 = pnand %p2193_p7, %p2187_p2 }
  0x21   : > { %2197 = shalt.err (!%p2194_p8)
}
  0x22   : > { %s2352_s22 = smov 128   ;;  %s2353_s24 = smov 8  }
  0x23   : > { %s2640_s5 = sld [smem:[#allocation16_spill]]  ;;  %s2209_s14 = scalar_lea.vmem %s313_s15, 1024 }
  0x24   : > { %p2210_p11 = scmp.ne.s32.totalorder %s313_s15, %s2209_s14  ;;  %p2217_p9 = scmp.lt.s32.totalorder %s313_s15, %s313_s15 }
  0x25   : > { %p2218_p6 = scmp.lt.s32.totalorder %s2209_s14, %s2209_s14 }
  0x26   : > { %p2212_p0 = pnand %p2210_p11, %p2174_p13 }
  0x27   : > { %p2219_p3 = por %p2218_p6, %p2217_p9 }
  0x28   : > { %p2213_p1 = pneg %p2212_p0 }
  0x29   : > { %1940 = dma.hbm_to_vmem [thread:$0]  (!%p2482_p12), %s2640_s5, 2048, %s329_s12, [#allocation6], %s2352_s22, %s2352_s22, %s2353_s24  }
  0x2a   : > { %p2220_p2 = pnand %p2219_p3, %p2213_p1 }
  0x2c   : > { %2223 = shalt.err (!%p2220_p2)
}
  0x2d   : > { %s2633_s16 = smov 64   ;;  %s2355_s26 = smov 4  }
  0x2e   : > { %1937 = dma.hbm_to_vmem [thread:$0]  (!%p2482_p12), %s2623_s3, 1024, %s313_s15, [#allocation3], %s2633_s16, %s2633_s16, %s2355_s26  }
  0x2f   : > { %s2356_s24 = smov [#allocation7]  }
  0x30   : > { %s344_s25 = sshll.u32 %s2356_s24, 4  ;;  %s345_s25 = int_to_ptr.vmem [resolvable:$true] %s344_s25 }
  0x31   : > { %s2235_s30 = scalar_lea.vmem %s345_s25, 8192  ;;  %p2243_p7 = scmp.lt.s32.totalorder %s345_s25, %s345_s25 }
  0x32   : > { %p2236_p4 = scmp.ne.s32.totalorder %s345_s25, %s2235_s30  ;;  %p2244_p8 = scmp.lt.s32.totalorder %s2235_s30, %s2235_s30 }
  0x34   : > { %p2238_p6 = pnand %p2236_p4, %p2174_p13  ;;  %p2245_p11 = por %p2244_p8, %p2243_p7 }
  0x36   : > { %p2239_p9 = pneg %p2238_p6 }
  0x38   : > { %p2246_p0 = pnand %p2245_p11, %p2239_p9 }
  0x3a   : > { %2249 = shalt.err (!%p2246_p0)
}
  0x3b   : > { %s2357_s14 = smov 256   ;;  %s2358_s5 = smov 16  }
  0x3c   : > { %1943 = dma.hbm_to_vmem [thread:$0]  (!%p2482_p12), %s2627_s7, 8192, %s345_s25, [#allocation6], %s2357_s14, %s2357_s14, %s2358_s5  }
  0x3d   : > { %s2359_s22 = smov [#allocation8]  }
  0x3e   : > { %s360_s24 = sshll.u32 %s2359_s22, 4  ;;  %s361_s24 = int_to_ptr.vmem [resolvable:$true] %s360_s24 }
  0x3f   : > { %s2261_s16 = scalar_lea.vmem %s361_s24, 4096  ;;  %p2269_p4 = scmp.lt.s32.totalorder %s361_s24, %s361_s24 }
  0x40   : > { %p2262_p1 = scmp.ne.s32.totalorder %s361_s24, %s2261_s16  ;;  %p2270_p6 = scmp.lt.s32.totalorder %s2261_s16, %s2261_s16 }
  0x42   : > { %p2264_p3 = pnand %p2262_p1, %p2174_p13  ;;  %p2271_p9 = por %p2270_p6, %p2269_p4 }
  0x44   : > { %p2265_p2 = pneg %p2264_p3 }
  0x46   : > { %p2272_p7 = pnand %p2271_p9, %p2265_p2 }
  0x48   : > { %2275 = shalt.err (!%p2272_p7)
}
  0x49   : > { %s2641_s30 = smov 64   ;;  %386 = sbr.rel (%p2474_p10) target bundleno = 1081 (0x439), region = 64 }
  0x4a   : > { %1946 = dma.hbm_to_vmem [thread:$0]  (!%p2482_p12), %s2629_s9, 4096, %s361_s24, [#allocation9], %s2641_s30, %s2641_s30, %s2355_s26  }
  0x4b   : > { %p2642_p13 = scmp.eq.s32.totalorder (!%p2474_p10), %s2446_s21, 0 }
  0x4e   : > { %2319 = dma.done.wait (%p2642_p13), [#allocation3], 1024   ;;  %p2643_p8 = pmov %p2642_p13 }
  0x50   : > { %2321 = vsyncadd (%p2643_p8), [#allocation3], 4294966272  ;;  %p2644_p11 = pmov %p2643_p8 }
  0x51   : > { %p2645_p0 = pmov %p2643_p8 }
  0x52   : > { %2323 = dma.done.wait (%p2644_p11), [#allocation6], 10240  }
  0x53   : > { %2325 = vsyncadd (%p2645_p0), [#allocation6], 4294957056  ;;  %p2646_p1 = pmov %p2645_p0 }
  0x54   : > { %p2647_p12 = pmov %p2645_p0 }
  0x55   : > { %2327 = dma.done.wait (%p2646_p1), [#allocation9], 4096  }
  0x56   : > { %2329 = vsyncadd (%p2647_p12), [#allocation9], 4294963200  ;;  %p437_p10 = scmp.lt.s32.totalorder %s2446_s21, 1  ;;  %v2360_v0 = vmov 0   ;;  %v2361_v1 = vmov 0.0   ;;  %v2008_v3 = vld [vmem:[#allocation2 + $0x38] sm:$0xff]  }
  0x57   : > { %2006 = vset.pattern.permute.xlu0 %v2360_v0  ;;  %1896 = vmatprep.subr.bf16.mxu0 %v2361_v1  ;;  %v2009_v4 = vld [vmem:[#allocation2 + $0x30] sm:$0xff]   ;;  %v2362_v5 = vmov 1   ;;  %v2010_v6 = vld [vmem:[#allocation2 + $0x28] sm:$0xff]   ;;  %vm2363_vm0 = vmmov 0   ;;  %v2011_v9 = vld [vmem:[#allocation2 + $0x20] sm:$0xff]   ;;  %s434_s22 = sand.u32 1, %s2340_s18  }
  0x58   : > { %s438_s26 = scalar_select %p437_p10, %s2446_s21, 1  ;;  %728 = vmatprep.mubr.bf16.mxu1 %v2360_v0  ;;  %1897 = vmatpush3.bf16.msra.mxu0 %v2008_v3  ;;  %v2016_v7 = vld [vmem:[#allocation5 + $0x74] ss:$8 sps:$4 sm:$0xff]   ;;  %v2018_v8 = vld [vmem:[#allocation5 + $0x70] ss:$8 sps:$4 sm:$0xff]   ;;  %v2014_v19 = vld [vmem:[#allocation2 + $0x8] sm:$0xff]  }
  0x59   : > { %1898 = vmatprep.subr.bf16.mxu0 %v2361_v1  ;;  %1912 = vmatprep.mubr.msk.bf16.mxu0 %vm2363_vm0, %v2361_v1  ;;  %v2019_v10 = vld [vmem:[#allocation5 + $0x64] ss:$8 sps:$4 sm:$0xff]   ;;  %v2021_v11 = vld [vmem:[#allocation5 + $0x60] ss:$8 sps:$4 sm:$0xff]   ;;  %v2022_v12 = vld [vmem:[#allocation5 + $0x54] ss:$8 sps:$4 sm:$0xff]  }
  0x5a   : > { %s1713_s29 = sshll.u32 %s438_s26, 3  ;;  %696 = vmatprep.subr.bf16.mxu1 %v2016_v7  ;;  %v2012_v13 = vld [vmem:[#allocation2 + $0x18] sm:$0xff]   ;;  %v2013_v15 = vld [vmem:[#allocation2 + $0x10] sm:$0xff]   ;;  %v2025_v16 = vld [vmem:[#allocation5 + $0x44] ss:$8 sps:$4 sm:$0xff]   ;;  %s1712_s24 = sshll.u32 %s434_s22, 3 }
  0x5b   : > { %s440_s14 = scalar_lea.vmem %s2620_s0, %s1713_s29  ;;  %697 = vmatpush1.bf16.msra.mxu1 %v2018_v8  ;;  %v2024_v14 = vld [vmem:[#allocation5 + $0x50] ss:$8 sps:$4 sm:$0xff]   ;;  %v2027_v17 = vld [vmem:[#allocation5 + $0x40] ss:$8 sps:$4 sm:$0xff]   ;;  %v2028_v18 = vld [vmem:[#allocation5 + $0x34] ss:$8 sps:$4 sm:$0xff]  }
  0x5c   : > { %v442_v2 = vld [vmem:[%s440_s14] sm:$0xff]  ;;  %1899 = vmatpush3.bf16.msra.mxu0 %v2009_v4  ;;  %698 = vmatprep.subr.bf16.mxu1 %v2019_v10  ;;  %v2030_v20 = vld [vmem:[#allocation5 + $0x30] ss:$8 sps:$4 sm:$0xff]   ;;  %v2034_v24 = vld [vmem:[#allocation5 + $0x14] ss:$8 sps:$4 sm:$0xff]   ;;  %s1840_s30 = sshll.u32 %s2446_s21, 7 }
  0x5d   : > { %447 = vperm.xlu0 %2006, %v442_v2   ;;  %1900 = vmatprep.subr.bf16.mxu0 %v2361_v1  ;;  %v2031_v21 = vld [vmem:[#allocation5 + $0x24] ss:$8 sps:$4 sm:$0xff]   ;;  %v2033_v23 = vld [vmem:[#allocation5 + $0x20] ss:$8 sps:$4 sm:$0xff]   ;;  %v2036_v36 = vld [vmem:[#allocation5 + $0x10] ss:$8 sps:$4 sm:$0xff]   ;;  %s2585_s13 = scalar_lea.hbm %s2631_s11, %s1840_s30 }
  0x5e   : > { %v2015_v22 = vld [vmem:[#allocation2] sm:$0xff]   ;;  %v2045_v41 = vld [vmem:[#allocation7 + $0xec] ss:$16 sps:$4 sm:$0xff]   ;;  %v2043_v10 = vld [vmem:[#allocation7 + $0xe8] ss:$16 sps:$4 sm:$0xff]   ;;  %s436_s5 = scalar_lea.vmem [#allocation10], %s1712_s24 }
  0x5f   : > { %699 = vmatpush1.bf16.msra.mxu1 %v2021_v11  ;;  %v1714_v25 = vld [vmem:[%s2621_s1] ss:$0 sm:$0xff]  ;;  %v1716_v29 = vld [vmem:[%s2621_s1 + $0x1] ss:$0 sm:$0xff]  ;;  %v2037_v37 = vld [vmem:[#allocation5 + $0x4] ss:$8 sps:$4 sm:$0xff]  }
  0x60   : > { %1901 = vmatpush3.bf16.msra.mxu0 %v2010_v6  ;;  %700 = vmatprep.subr.bf16.mxu1 %v2022_v12  ;;  %v1715_v28 = vld [vmem:[%s2622_s2] ss:$0 sm:$0xff]  ;;  %v2042_v40 = vld [vmem:[#allocation7 + $0xe4] ss:$16 sps:$4 sm:$0xff]   ;;  %v2051_v12 = vld [vmem:[#allocation7 + $0xcc] ss:$16 sps:$4 sm:$0xff]  }
  0x61   : > { %2007 = vset.pattern.permute.xlu0 %v2362_v5  ;;  %1902 = vmatprep.subr.bf16.mxu0 %v2361_v1  ;;  %v2039_v38 = vld [vmem:[#allocation5] ss:$8 sps:$4 sm:$0xff]   ;;  %v2048_v42 = vld [vmem:[#allocation7 + $0xc4] ss:$16 sps:$4 sm:$0xff]   ;;  %s1600_s25 = sshll.u32 %s436_s5, 4  ;;  %s1587_s16 = scalar_lea.sflag [#allocation4], %s434_s22  ;;  %s1601_s25 = int_to_ptr.vmem [resolvable:$true] %s1600_s25 }
  0x62   : > { %464 = vperm.xlu0 %2007, %v442_v2   ;;  %v2040_v39 = vld [vmem:[#allocation7 + $0xe0] ss:$16 sps:$4 sm:$0xff]   ;;  %v2054_v44 = vld [vmem:[#allocation7 + $0xa4] ss:$16 sps:$4 sm:$0xff]   ;;  %s2276_s14 = scalar_lea.vmem %s1601_s25, 128  ;;  %s2364_s15 = smov [#allocation10]  }
  0x63   : > { %701 = vmatpush1.bf16.msra.mxu1 %v2024_v14  ;;  %v2046_v43 = vld [vmem:[#allocation7 + $0xc0] ss:$16 sps:$4 sm:$0xff]   ;;  %v2060_v46 = vld [vmem:[#allocation7 + $0x84] ss:$16 sps:$4 sm:$0xff]   ;;  %v2049_v14 = vld [vmem:[#allocation7 + $0xc8] ss:$16 sps:$4 sm:$0xff]   ;;  %p2277_p3 = scmp.ne.s32.totalorder %s1601_s25, %s2276_s14 }
  0x64   : > { %1903 = vmatpush3.bf16.msra.mxu0 %v2011_v9  ;;  %702 = vmatprep.subr.bf16.mxu1 %v2025_v16  ;;  %v2052_v45 = vld [vmem:[#allocation7 + $0xa0] ss:$16 sps:$4 sm:$0xff]   ;;  %v2066_v48 = vld [vmem:[#allocation7 + $0x64] ss:$16 sps:$4 sm:$0xff]   ;;  %v2055_v16 = vld [vmem:[#allocation7 + $0xa8] ss:$16 sps:$4 sm:$0xff]  }
  0x65   : > { %1904 = vmatprep.subr.bf16.mxu0 %v2361_v1  ;;  %v2058_v47 = vld [vmem:[#allocation7 + $0x80] ss:$16 sps:$4 sm:$0xff]   ;;  %v2072_v50 = vld [vmem:[#allocation7 + $0x44] ss:$16 sps:$4 sm:$0xff]   ;;  %p2278_p2 = pnand %p2277_p3, %p2463_p5  ;;  %s2280_s12 = sshll.u32 %s2364_s15, 4  ;;  %s2281_s12 = int_to_ptr.vmem [resolvable:$false] %s2280_s12 }
  0x66   : > { %v2064_v49 = vld [vmem:[#allocation7 + $0x60] ss:$16 sps:$4 sm:$0xff]   ;;  %v2078_v52 = vld [vmem:[#allocation7 + $0x24] ss:$16 sps:$4 sm:$0xff]   ;;  %s2282_s21 = scalar_lea.vmem %s2281_s12, 256  ;;  %p2283_p6 = scmp.lt.s32.totalorder %s1601_s25, %s2281_s12 }
  0x67   : > { %703 = vmatpush1.bf16.msra.mxu1 %v2027_v17  ;;  %v2070_v51 = vld [vmem:[#allocation7 + $0x40] ss:$16 sps:$4 sm:$0xff]   ;;  %v2084_v54 = vld [vmem:[#allocation7 + $0x4] ss:$16 sps:$4 sm:$0xff]   ;;  %v2063_v17 = vld [vmem:[#allocation7 + $0x8c] ss:$16 sps:$4 sm:$0xff]   ;;  %p2279_p4 = pneg %p2278_p2  ;;  %p2284_p9 = scmp.lt.s32.totalorder %s2282_s21, %s2276_s14 }
  0x68   : > { %1905 = vmatpush3.bf16.msra.mxu0 %v2012_v13  ;;  %704 = vmatprep.subr.bf16.mxu1 %v2028_v18  ;;  %v2076_v53 = vld [vmem:[#allocation7 + $0x20] ss:$16 sps:$4 sm:$0xff]   ;;  %v2090_v56 = vld [vmem:[#allocation7 + $0x1e4] ss:$16 sps:$4 sm:$0xff]   ;;  %v2061_v18 = vld [vmem:[#allocation7 + $0x88] ss:$16 sps:$4 sm:$0xff]  }
  0x69   : > { %1906 = vmatprep.subr.bf16.mxu0 %v2361_v1  ;;  %v2082_v55 = vld [vmem:[#allocation7] ss:$16 sps:$4 sm:$0xff]   ;;  %v2096_v58 = vld [vmem:[#allocation7 + $0x1c4] ss:$16 sps:$4 sm:$0xff]   ;;  %p2285_p7 = por %p2284_p9, %p2283_p6 }
  0x6a   : > { %v2088_v57 = vld [vmem:[#allocation7 + $0x1e0] ss:$16 sps:$4 sm:$0xff]   ;;  %v2102_v60 = vld [vmem:[#allocation7 + $0x1a4] ss:$16 sps:$4 sm:$0xff]  }
  0x6b   : > { %705 = vmatpush1.bf16.msra.mxu1 %v2030_v20  ;;  %v2094_v59 = vld [vmem:[#allocation7 + $0x1c0] ss:$16 sps:$4 sm:$0xff]   ;;  %v2108_v62 = vld [vmem:[#allocation7 + $0x184] ss:$16 sps:$4 sm:$0xff]   ;;  %v2067_v20 = vld [vmem:[#allocation7 + $0x68] ss:$16 sps:$4 sm:$0xff]   ;;  %p2286_p13 = pnand %p2285_p7, %p2279_p4 }
  0x6c   : > { %1907 = vmatpush3.bf16.msra.mxu0 %v2013_v15  ;;  %706 = vmatprep.subr.bf16.mxu1 %v2031_v21  ;;  %v2100_v61 = vld [vmem:[#allocation7 + $0x1a0] ss:$16 sps:$4 sm:$0xff]   ;;  %v2114_v0 = vld [vmem:[#allocation7 + $0x164] ss:$16 sps:$4 sm:$0xff]   ;;  %v2057_v15 = vld [vmem:[#allocation7 + $0xac] ss:$16 sps:$4 sm:$0xff]  }
  0x6d   : > { %1908 = vmatprep.subr.bf16.mxu0 %v2361_v1  ;;  %v2106_v63 = vld [vmem:[#allocation7 + $0x180] ss:$16 sps:$4 sm:$0xff]   ;;  %v2120_v2 = vld [vmem:[#allocation7 + $0x144] ss:$16 sps:$4 sm:$0xff]   ;;  %v2075_v21 = vld [vmem:[#allocation7 + $0x4c] ss:$16 sps:$4 sm:$0xff]  }
  0x6e   : > { %v2118_v3 = vld [vmem:[#allocation7 + $0x140] ss:$16 sps:$4 sm:$0xff]  }
  0x6f   : > { %707 = vmatpush1.bf16.msra.mxu1 %v2033_v23  ;;  %v1717_v4 = vld [vmem:[%s2624_s4] ss:$0 sm:$0xff]  ;;  %v2081_v23 = vld [vmem:[#allocation7 + $0x2c] ss:$16 sps:$4 sm:$0xff]  }
  0x70   : > { %1909 = vmatpush3.bf16.msra.mxu0 %v2014_v19  ;;  %708 = vmatprep.subr.bf16.mxu1 %v2034_v24  ;;  %v2069_v19 = vld [vmem:[#allocation7 + $0x6c] ss:$16 sps:$4 sm:$0xff]   ;;  %v2079_v24 = vld [vmem:[#allocation7 + $0x28] ss:$16 sps:$4 sm:$0xff]  }
  0x71   : > { %1910 = vmatprep.subr.bf16.mxu0 %v2361_v1  ;;  %v2112_v1 = vld [vmem:[#allocation7 + $0x160] ss:$16 sps:$4 sm:$0xff]  }
  0x73   : > { %709 = vmatpush1.bf16.msra.mxu1 %v2036_v36  ;;  %v2115_v36 = vld [vmem:[#allocation7 + $0x168] ss:$16 sps:$4 sm:$0xff]  }
  0x74   : > { %1911 = vmatpush3.bf16.msra.mxu0 %v2015_v22  ;;  %710 = vmatprep.subr.bf16.mxu1 %v2037_v37  ;;  %v2073_v22 = vld [vmem:[#allocation7 + $0x48] ss:$16 sps:$4 sm:$0xff]   ;;  %v2123_v37 = vld [vmem:[#allocation7 + $0x14c] ss:$16 sps:$4 sm:$0xff]  }
  0x75   : > { %1147 = vmatprep.subr.bf16.mxu0 %v2042_v40  ;;  %v2129_v40 = vld [vmem:[#allocation7 + $0x12c] ss:$16 sps:$4 sm:$0xff]  }
  0x77   : > { %711 = vmatpush1.bf16.msra.mxu1 %v2039_v38  ;;  %v2121_v38 = vld [vmem:[#allocation7 + $0x148] ss:$16 sps:$4 sm:$0xff]  }
  0x78   : > { %1188 = vmatprep.subr.bf16.mxu1 %v2045_v41  ;;  %v2124_v41 = vld [vmem:[#allocation7 + $0x120] ss:$16 sps:$4 sm:$0xff]  }
  0xd8   : > { %v448_v26 = vpop.permute.xlu0 %447 }
  0xd9   : > { %v454_v27 = vmul.f32 %v1714_v25, %v448_v26  ;;  %v2087_v25 = vld [vmem:[#allocation7 + $0xc] ss:$16 sps:$4 sm:$0xff]   ;;  %v2085_v26 = vld [vmem:[#allocation7 + $0x8] ss:$16 sps:$4 sm:$0xff]  }
  0xdb   : > { %v461_v31 = vadd.f32 %v1715_v28, %v454_v27  ;;  %v2093_v27 = vld [vmem:[#allocation7 + $0x1ec] ss:$16 sps:$4 sm:$0xff]   ;;  %v2091_v28 = vld [vmem:[#allocation7 + $0x1e8] ss:$16 sps:$4 sm:$0xff]  }
  0xdd   : > { %v465_v30 = vpop.permute.xlu0 %464 }
  0xde   : > { %v471_v32 = vmul.f32 %v1716_v29, %v465_v30  ;;  %v2099_v29 = vld [vmem:[#allocation7 + $0x1cc] ss:$16 sps:$4 sm:$0xff]   ;;  %v2097_v30 = vld [vmem:[#allocation7 + $0x1c8] ss:$16 sps:$4 sm:$0xff]  }
  0xe0   : > { %v472_v33 = vadd.f32 %v471_v32, %v461_v31  ;;  %v2105_v31 = vld [vmem:[#allocation7 + $0x1ac] ss:$16 sps:$4 sm:$0xff]   ;;  %v2103_v32 = vld [vmem:[#allocation7 + $0x1a8] ss:$16 sps:$4 sm:$0xff]  }
  0xe2   : > { %v473_v34 = vmax.f32 %v472_v33, 0.0  ;;  %v2111_v33 = vld [vmem:[#allocation7 + $0x18c] ss:$16 sps:$4 sm:$0xff]  }
  0xe4   : > { %v474_v35 = vpack.c.bf16 %v473_v34, %v473_v34  ;;  %v2109_v34 = vld [vmem:[#allocation7 + $0x188] ss:$16 sps:$4 sm:$0xff]  }
  0xe6   : > { %1913 = vmatmul.mubr.bf16.vlgmr.msra.gmra.mxu0 %v474_v35  ;;  %v2117_v35 = vld [vmem:[#allocation7 + $0x16c] ss:$16 sps:$4 sm:$0xff]  }
  0xe7   : > { %1148 = vmatpush1.bf16.msra.mxu0 %v2040_v39  ;;  %v2126_v39 = vld [vmem:[#allocation7 + $0x124] ss:$16 sps:$4 sm:$0xff]  }
  0xe8   : > { %1149 = vmatprep.subr.bf16.mxu0 %v2048_v42  ;;  %v2127_v42 = vld [vmem:[#allocation7 + $0x128] ss:$16 sps:$4 sm:$0xff]  }
  0xeb   : > { %1150 = vmatpush1.bf16.msra.mxu0 %v2046_v43  ;;  %v2132_v43 = vld [vmem:[#allocation7 + $0x104] ss:$16 sps:$4 sm:$0xff]  }
  0xec   : > { %1151 = vmatprep.subr.bf16.mxu0 %v2054_v44  ;;  %v2135_v44 = vld [vmem:[#allocation7 + $0x10c] ss:$16 sps:$4 sm:$0xff]  }
  0xef   : > { %1152 = vmatpush1.bf16.msra.mxu0 %v2052_v45  ;;  %v2130_v45 = vld [vmem:[#allocation7 + $0x100] ss:$16 sps:$4 sm:$0xff]  }
  0xf0   : > { %1153 = vmatprep.subr.bf16.mxu0 %v2060_v46  ;;  %v2133_v46 = vld [vmem:[#allocation7 + $0x108] ss:$16 sps:$4 sm:$0xff]  }
  0xf3   : > { %1154 = vmatpush1.bf16.msra.mxu0 %v2058_v47  ;;  %v2136_v47 = vld [vmem:[#allocation8 + $0x78] sm:$0xff]  }
  0xf4   : > { %1155 = vmatprep.subr.bf16.mxu0 %v2066_v48  ;;  %v2137_v48 = vld [vmem:[#allocation8 + $0xf8] sm:$0xff]  }
  0xf7   : > { %1156 = vmatpush1.bf16.msra.mxu0 %v2064_v49  ;;  %v606_v49 = vlaneseq }
  0xf8   : > { %1157 = vmatprep.subr.bf16.mxu0 %v2072_v50 }
  0xf9   : > { %v2557_v50 = vshrl.u32 %v606_v49, 7 }
  0xfb   : > { %1158 = vmatpush1.bf16.msra.mxu0 %v2070_v51  ;;  %v608_v51 = vsub.s32 0, %v2557_v50 }
  0xfc   : > { %1159 = vmatprep.subr.bf16.mxu0 %v2078_v52  ;;  %v604_v52 = vld [vmem:[%s2626_s6] sm:$0x3] }
  0xff   : > { %1160 = vmatpush1.bf16.msra.mxu0 %v2076_v53  ;;  %v612_v53 = vsub.s32 1, %v2557_v50 }
 0x100   : > { %1161 = vmatprep.subr.bf16.mxu0 %v2084_v54  ;;  %v609_v54 = vrot.slane %v604_v52, %v608_v51 }
 0x103   : > { %1162 = vmatpush1.bf16.msra.mxu0 %v2082_v55  ;;  %v613_v55 = vrot.slane %v604_v52, %v612_v53 }
 0x104   : > { %1163 = vmatprep.subr.bf16.mxu0 %v2090_v56 }
 0x107   : > { %1164 = vmatpush2.bf16.msra.mxu0 %v2088_v57 }
 0x108   : > { %1165 = vmatprep.subr.bf16.mxu0 %v2096_v58 }
 0x10b   : > { %1166 = vmatpush2.bf16.msra.mxu0 %v2094_v59 }
 0x10c   : > { %1167 = vmatprep.subr.bf16.mxu0 %v2102_v60 }
 0x10f   : > { %1168 = vmatpush2.bf16.msra.mxu0 %v2100_v61 }
 0x110   : > { %1169 = vmatprep.subr.bf16.mxu0 %v2108_v62 }
 0x113   : > { %1170 = vmatpush2.bf16.msra.mxu0 %v2106_v63 }
 0x114   : > { %1171 = vmatprep.subr.bf16.mxu0 %v2114_v0 }
 0x117   : > { %1172 = vmatpush2.bf16.msra.mxu0 %v2112_v1  ;;  %v2138_v1 = vld [vmem:[#allocation8 + $0x38] sm:$0xff]  }
 0x118   : > { %1173 = vmatprep.subr.bf16.mxu0 %v2120_v2  ;;  %v2139_v2 = vld [vmem:[#allocation8 + $0xb8] sm:$0xff]  }
 0x11b   : > { %1174 = vmatpush2.bf16.msra.mxu0 %v2118_v3 }
 0x11c   : > { %1175 = vmatprep.subr.bf16.mxu0 %v2126_v39 }
 0x11f   : > { %1176 = vmatpush2.bf16.msra.mxu0 %v2124_v41 }
 0x120   : > { %1177 = vmatprep.subr.bf16.mxu0 %v2132_v43 }
 0x123   : > { %1178 = vmatpush2.bf16.msra.mxu0 %v2130_v45 }
 0x124   : > { %1852 = vmatprep.subr.bf16.mxu0 %v2136_v47 }
 0x1a6   : > { %v580_v5 = vpop.f32.mrf.mxu0 }
 0x1a7   : > { %v581_v6 = vadd.f32 %v1717_v4, %v580_v5  ;;  %v2140_v4 = vld [vmem:[#allocation8 + $0x70] sm:$0xff]  }
 0x1a8   : > { %v1914_v7 = vpop.f32.mrf.mxu0  ;;  %v2141_v5 = vld [vmem:[#allocation8 + $0xf0] sm:$0xff]  }
 0x1a9   : > { %v586_v8 = vmax.f32 %v581_v6, 0.0  ;;  %v2142_v6 = vld [vmem:[#allocation8 + $0x30] sm:$0xff]  }
 0x1aa   : > { %v583_v9 = vpop.f32.mrf.mxu0  ;;  %v2143_v7 = vld [vmem:[#allocation8 + $0xb0] sm:$0xff]  }
 0x1ab   : > { %v587_v11 = vpack.c.bf16 %v586_v8, %v586_v8  ;;  %v2144_v8 = vld [vmem:[#allocation8 + $0x68] sm:$0xff]  }
 0x1ac   : > { %v1915_v13 = vpop.f32.mrf.mxu0  ;;  %v2145_v9 = vld [vmem:[#allocation8 + $0xe8] sm:$0xff]  }
 0x1ad   : > { %729 = vmatmul.mubr.bf16.vlgmr.msra.gmra.mxu1 %v587_v11  ;;  %v2147_v11 = vld [vmem:[#allocation8 + $0xa8] sm:$0xff]   ;;  %v2149_v13 = vld [vmem:[#allocation8 + $0xe0] sm:$0xff]  }
 0x1ae   : > { %1189 = vmatpush1.bf16.msra.mxu1 %v2043_v10  ;;  %v2146_v10 = vld [vmem:[#allocation8 + $0x28] sm:$0xff]  }
 0x1af   : > { %1190 = vmatprep.subr.bf16.mxu1 %v2051_v12  ;;  %v2148_v12 = vld [vmem:[#allocation8 + $0x60] sm:$0xff]  }
 0x1b2   : > { %1191 = vmatpush1.bf16.msra.mxu1 %v2049_v14  ;;  %v2150_v14 = vld [vmem:[#allocation8 + $0x20] sm:$0xff]  }
 0x1b3   : > { %1192 = vmatprep.subr.bf16.mxu1 %v2057_v15  ;;  %v2151_v15 = vld [vmem:[#allocation8 + $0xa0] sm:$0xff]  }
 0x1b6   : > { %1193 = vmatpush1.bf16.msra.mxu1 %v2055_v16  ;;  %v2152_v16 = vld [vmem:[#allocation8 + $0x58] sm:$0xff]  }
 0x1b7   : > { %1194 = vmatprep.subr.bf16.mxu1 %v2063_v17  ;;  %v2153_v17 = vld [vmem:[#allocation8 + $0xd8] sm:$0xff]  }
 0x1ba   : > { %1195 = vmatpush1.bf16.msra.mxu1 %v2061_v18  ;;  %v2154_v18 = vld [vmem:[#allocation8 + $0x18] sm:$0xff]  }
 0x1bb   : > { %1196 = vmatprep.subr.bf16.mxu1 %v2069_v19  ;;  %v2155_v19 = vld [vmem:[#allocation8 + $0x98] sm:$0xff]  }
 0x1be   : > { %1197 = vmatpush1.bf16.msra.mxu1 %v2067_v20  ;;  %v2156_v20 = vld [vmem:[#allocation8 + $0x50] sm:$0xff]  }
 0x1bf   : > { %1198 = vmatprep.subr.bf16.mxu1 %v2075_v21  ;;  %v2157_v21 = vld [vmem:[#allocation8 + $0xd0] sm:$0xff]  }
 0x1c2   : > { %1199 = vmatpush1.bf16.msra.mxu1 %v2073_v22  ;;  %v2158_v22 = vld [vmem:[#allocation8 + $0x10] sm:$0xff]  }
 0x1c3   : > { %1200 = vmatprep.subr.bf16.mxu1 %v2081_v23  ;;  %v2159_v23 = vld [vmem:[#allocation8 + $0x90] sm:$0xff]  }
 0x1c6   : > { %1201 = vmatpush1.bf16.msra.mxu1 %v2079_v24  ;;  %v2160_v24 = vld [vmem:[#allocation8 + $0x48] sm:$0xff]  }
 0x1c7   : > { %1202 = vmatprep.subr.bf16.mxu1 %v2087_v25  ;;  %v2161_v25 = vld [vmem:[#allocation8 + $0xc8] sm:$0xff]  }
 0x1ca   : > { %1203 = vmatpush1.bf16.msra.mxu1 %v2085_v26  ;;  %v2162_v26 = vld [vmem:[#allocation8 + $0x8] sm:$0xff]  }
 0x1cb   : > { %1204 = vmatprep.subr.bf16.mxu1 %v2093_v27  ;;  %v2163_v27 = vld [vmem:[#allocation8 + $0x88] sm:$0xff]  }
 0x1ce   : > { %1205 = vmatpush2.bf16.msra.mxu1 %v2091_v28  ;;  %v2164_v28 = vld [vmem:[#allocation8 + $0x40] sm:$0xff]  }
 0x1cf   : > { %1206 = vmatprep.subr.bf16.mxu1 %v2099_v29  ;;  %v2165_v29 = vld [vmem:[#allocation8 + $0xc0] sm:$0xff]  }
 0x1d2   : > { %1207 = vmatpush2.bf16.msra.mxu1 %v2097_v30  ;;  %v2166_v30 = vld [vmem:[#allocation8] sm:$0xff]  }
 0x1d3   : > { %1208 = vmatprep.subr.bf16.mxu1 %v2105_v31  ;;  %v2167_v31 = vld [vmem:[#allocation8 + $0x80] sm:$0xff]  }
 0x1d6   : > { %1209 = vmatpush2.bf16.msra.mxu1 %v2103_v32  ;;  %v817_v32 = vsub.s32 2, %v2557_v50 }
 0x1d7   : > { %1210 = vmatprep.subr.bf16.mxu1 %v2111_v33  ;;  %v805_v33 = vld [vmem:[%s2628_s8] sm:$0xf] }
 0x1da   : > { %1211 = vmatpush2.bf16.msra.mxu1 %v2109_v34  ;;  %v821_v34 = vsub.s32 3, %v2557_v50 }
 0x1db   : > { %1212 = vmatprep.subr.bf16.mxu1 %v2117_v35  ;;  %v810_v35 = vrot.slane %v805_v33, %v608_v51 }
 0x1de   : > { %1213 = vmatpush2.bf16.msra.mxu1 %v2115_v36  ;;  %v818_v36 = vrot.slane %v805_v33, %v817_v32 }
 0x1df   : > { %1214 = vmatprep.subr.bf16.mxu1 %v2123_v37  ;;  %v814_v37 = vrot.slane %v805_v33, %v612_v53 }
 0x1e2   : > { %1215 = vmatpush2.bf16.msra.mxu1 %v2121_v38  ;;  %v822_v38 = vrot.slane %v805_v33, %v821_v34 }
 0x1e3   : > { %1216 = vmatprep.subr.bf16.mxu1 %v2129_v40 }
 0x1e6   : > { %1217 = vmatpush2.bf16.msra.mxu1 %v2127_v42 }
 0x1e7   : > { %1218 = vmatprep.subr.bf16.mxu1 %v2135_v44 }
 0x1ea   : > { %1219 = vmatpush2.bf16.msra.mxu1 %v2133_v46 }
 0x1eb   : > { %1874 = vmatprep.subr.bf16.mxu1 %v2137_v48 }
 0x26d   : > { %v730_v56 = vpop.f32.mrf.mxu1 }
 0x26e   : > { %v731_v57 = vadd.f32 %v730_v56, %v609_v54 }
 0x26f   : > { %v732_v58 = vpop.f32.mrf.mxu1 }
 0x270   : > { %v733_v59 = vadd.f32 %v732_v58, %v613_v55  ;;  %v737_v60 = vmax.f32 %v731_v57, 0.0 }
 0x271   : > { %v734_v61 = vpop.f32.mrf.mxu1 }
 0x272   : > { %v738_v62 = vmax.f32 %v733_v59, 0.0  ;;  %v739_v3 = vpack.c.bf16 %v737_v60, %v737_v60  ;;  %v1806_v61 = vld [vmem:[%s2630_s10] ss:$0 sm:$0xff] }
 0x273   : > { %v735_v63 = vpop.f32.mrf.mxu1 }
 0x274   : > { %v740_v0 = vpack.c.bf16 %v738_v62, %v738_v62 }
 0x276   : > { %1179 = vmatprep.mubr.bf16.mxu0 %v740_v0  ;;  %1220 = vmatprep.mubr.bf16.mxu1 %v740_v0 }
 0x277   : > { %1180 = vmatmul.mubr.bf16.vlgmr.msra.gmra.mxu0 %v739_v3  ;;  %1221 = vmatmul.mubr.bf16.vlgmr.msra.gmra.mxu1 %v739_v3 }
 0x278   : > { %1853 = vmatpush3.bf16.msra.mxu0 %v2138_v1  ;;  %1875 = vmatpush3.bf16.msra.mxu1 %v2139_v2 }
 0x279   : > { %1854 = vmatprep.subr.bf16.mxu0 %v2140_v4  ;;  %1876 = vmatprep.subr.bf16.mxu1 %v2141_v5 }
 0x27c   : > { %1855 = vmatpush3.bf16.msra.mxu0 %v2142_v6  ;;  %1877 = vmatpush3.bf16.msra.mxu1 %v2143_v7 }
 0x27d   : > { %1856 = vmatprep.subr.bf16.mxu0 %v2144_v8  ;;  %1878 = vmatprep.subr.bf16.mxu1 %v2145_v9 }
 0x280   : > { %1857 = vmatpush3.bf16.msra.mxu0 %v2146_v10  ;;  %1879 = vmatpush3.bf16.msra.mxu1 %v2147_v11 }
 0x281   : > { %1858 = vmatprep.subr.bf16.mxu0 %v2148_v12  ;;  %1880 = vmatprep.subr.bf16.mxu1 %v2149_v13 }
 0x284   : > { %1859 = vmatpush3.bf16.msra.mxu0 %v2150_v14  ;;  %1881 = vmatpush3.bf16.msra.mxu1 %v2151_v15 }
 0x285   : > { %1860 = vmatprep.subr.bf16.mxu0 %v2152_v16  ;;  %1882 = vmatprep.subr.bf16.mxu1 %v2153_v17 }
 0x288   : > { %1861 = vmatpush3.bf16.msra.mxu0 %v2154_v18  ;;  %1883 = vmatpush3.bf16.msra.mxu1 %v2155_v19 }
 0x289   : > { %1862 = vmatprep.subr.bf16.mxu0 %v2156_v20  ;;  %1884 = vmatprep.subr.bf16.mxu1 %v2157_v21 }
 0x28c   : > { %1863 = vmatpush3.bf16.msra.mxu0 %v2158_v22  ;;  %1885 = vmatpush3.bf16.msra.mxu1 %v2159_v23 }
 0x28d   : > { %1864 = vmatprep.subr.bf16.mxu0 %v2160_v24  ;;  %1886 = vmatprep.subr.bf16.mxu1 %v2161_v25 }
 0x290   : > { %1865 = vmatpush3.bf16.msra.mxu0 %v2162_v26  ;;  %1887 = vmatpush3.bf16.msra.mxu1 %v2163_v27 }
 0x291   : > { %1866 = vmatprep.subr.bf16.mxu0 %v2164_v28  ;;  %1888 = vmatprep.subr.bf16.mxu1 %v2165_v29 }
 0x294   : > { %1867 = vmatpush3.bf16.msra.mxu0 %v2166_v30  ;;  %1889 = vmatpush3.bf16.msra.mxu1 %v2167_v31 }
 0x337   : > { %v1181_v39 = vpop.f32.mrf.mxu0  ;;  %v1222_v40 = vpop.f32.mrf.mxu1 }
 0x338   : > { %v1182_v41 = vadd.f32 %v1181_v39, %v810_v35  ;;  %v1223_v42 = vadd.f32 %v1222_v40, %v818_v36 }
 0x339   : > { %v1183_v43 = vpop.f32.mrf.mxu0  ;;  %v1224_v44 = vpop.f32.mrf.mxu1 }
 0x33a   : > { %v1184_v45 = vadd.f32 %v1183_v43, %v814_v37  ;;  %v1225_v46 = vadd.f32 %v1224_v44, %v822_v38  ;;  %v1229_v47 = vmax.f32 %v1182_v41, 0.0  ;;  %v1231_v48 = vmax.f32 %v1223_v42, 0.0 }
 0x33b   : > { %v1185_v49 = vpop.f32.mrf.mxu0  ;;  %v1226_v52 = vpop.f32.mrf.mxu1 }
 0x33c   : > { %v1230_v54 = vmax.f32 %v1184_v45, 0.0  ;;  %v1232_v55 = vmax.f32 %v1225_v46, 0.0  ;;  %v1233_v53 = vpack.c.bf16 %v1229_v47, %v1229_v47  ;;  %v1235_v58 = vpack.c.bf16 %v1231_v48, %v1231_v48 }
 0x33d   : > { %v1186_v51 = vpop.f32.mrf.mxu0  ;;  %v1227_v56 = vpop.f32.mrf.mxu1 }
 0x33e   : > { %v1234_v57 = vpack.c.bf16 %v1230_v54, %v1230_v54  ;;  %v1236_v50 = vpack.c.bf16 %v1232_v55, %v1232_v55 }
 0x340   : > { %1532 = vmatprep.mubr.bf16.mxu0 %v1234_v57  ;;  %1572 = vmatprep.mubr.bf16.mxu1 %v1236_v50 }
 0x341   : > { %1533 = vmatmul.mubr.bf16.vlgmr.msra.gmra.mxu0 %v1233_v53  ;;  %1573 = vmatmul.mubr.bf16.vlgmr.msra.gmra.mxu1 %v1235_v58 }
 0x401   : > { %v1868_v59 = vpop.f32.mrf.mxu0  ;;  %v1890_v60 = vpop.f32.mrf.mxu1 }
 0x403   : > { %v1869_v62 = vpop.f32.mrf.mxu0  ;;  %v1891_v63 = vpop.f32.mrf.mxu1 }
 0x404   : > { %v1870_v0 = vadd.f32 %v1869_v62, %v1868_v59  ;;  %v1892_v4 = vadd.f32 %v1891_v63, %v1890_v60 }
 0x405   : > { %v1871_v1 = vpop.f32.mrf.mxu0  ;;  %v1893_v2 = vpop.f32.mrf.mxu1 }
 0x406   : > { %v1535_v3 = vadd.f32 %v1870_v0, %v1806_v61 }
 0x407   : > { %v1872_v5 = vpop.f32.mrf.mxu0  ;;  %v1894_v6 = vpop.f32.mrf.mxu1 }
 0x408   : > { %v1575_v7 = vadd.f32 %v1892_v4, %v1535_v3 }
 0x40a   : > { %v1580_v8 = vsub.f32 0.0, %v1575_v7 }
 0x40c   : > { %v1581_v9 = vmul.f32 1.442695, %v1580_v8 }
 0x40e   : > { %2168 = vpow2.f32 %v1581_v9 }
 0x41b   : > { %v2169_v10 = vpop.eup %2168 }
 0x41c   : > { %v1583_v11 = vadd.f32 1.0, %v2169_v10 }
 0x41e   : > { %2170 = vrcp.f32 %v1583_v11 }
 0x42b   : > { %v2171_v12 = vpop.eup %2170 }
 0x42c   : > { %1585 = vst [vmem:[%s436_s5] sm:$0xff] %v2171_v12 }
 0x42d   : > { %2289 = shalt.err (!%p2286_p13)
}
 0x42e   : > { %s2290_s24 = scalar_lea.hbm %s2585_s13, 128  ;;  %s2294_s5 = scalar_lea.hbm %s2631_s11, 256 }
 0x42f   : > { %p2291_p8 = scmp.ne.s32.totalorder %s2585_s13, %s2290_s24  ;;  %p2295_p1 = scmp.lt.s32.totalorder %s2585_s13, %s2631_s11 }
 0x430   : > { %p2296_p12 = scmp.lt.s32.totalorder %s2294_s5, %s2290_s24 }
 0x431   : > { %p2292_p11 = pnand %p2291_p8, %p2463_p5 }
 0x432   : > { %p2297_p10 = por %p2296_p12, %p2295_p1 }
 0x433   : > { %p2293_p0 = pneg %p2292_p11 }
 0x435   : > { %p2298_p3 = pnand %p2297_p10, %p2293_p0 }
 0x437   : > { %2301 = shalt.err (!%p2298_p3)
}
 0x438   : > { %1932 = dma.vmem_to_hbm [thread:$0]  (%p2463_p5), %s1601_s25, 128, %s2585_s13, %s1587_s16  }
 0x439 PF: > { %p1959_p2 = scmp.ge.s32.totalorder %s2348_s20, 2  ;;  %s1612_s14 = sand.u32 1, %s2336_s17  }
 0x43a   : > { %p2648_p4 = scmp.ne.s32.totalorder %s2637_s28, 0  ;;  %s1613_s15 = scalar_lea.sflag [#allocation4], %s1612_s14 }
 0x43c   : > { %p1948_p6 = pnand %p1959_p2, %p2648_p4 }
 0x43e   : > { %p1949_p9 = pneg %p1948_p6 }
 0x440   : > { %2331 = dma.done.wait (%p1949_p9), %s1613_s15, 128  }
 0x441   : > { %2333 = vsyncadd (%p1949_p9), %s1613_s15, 4294967168  ;;  %s2649_s12 = sld [smem:[#allocation15_spill]]  ;;  %p24_p7 = scmp.ge.s32.totalorder %s2450_s23, 4  }
 0x442   : > { %s2650_s17 = smov %s2340_s18  ;;  %s2651_s18 = smov %s2344_s19 }
 0x443   : > { %s2653_s20 = smov %s2450_s23  ;;  %26 = sbr.rel (!%p24_p7) target bundleno = 8 (0x8), region = 116 }
 0x447   : > { %s2652_s19 = smov %s2649_s12 }
 0x448   :  { %1618 = vsyncpa [#allocation3], 1 }
 0x449   :  { %1620 = vsyncpa [#allocation3 + $0x1], 1 }
 0x44a   :  { %1621 = vsyncpa [#allocation6], 1 }
 0x44b   :  { %1622 = vsyncpa [#allocation9], 1 }
 0x44c   :  { %1623 = vsyncpa [#allocation4], 1 }
 0x44d   :  { %1625 = vsyncpa [#allocation4 + $0x1], 1 }

</bundles_post_ra>
